<compile_context>
chip_gen: v6e
topology: v6e:2x2x1
jax: 0.10.0
libtpu: 0.0.40
codegen_flags: <defaults>
</compile_context>

<pallas_src>
import functools

import jax
import jax.numpy as jnp
from jax.experimental import pallas as pl
from jax.experimental.pallas import tpu as pltpu

_LANE = 128  # TPU lane width: feature dims padded to multiples of this.


def _round_up(n, m):
    return ((n + m - 1) // m) * m


@functools.lru_cache(maxsize=None)
def _vmem_capacity_bytes():
    """Per-TensorCore VMEM capacity; conservative 64 MiB if query fails."""
    try:
        info = pltpu.get_tpu_info()
        cap = getattr(info, "vmem_capacity_bytes", None)
        if cap:
            return int(cap)
    except Exception:  # query unsupported on this backend/build
        pass
    return 64 << 20


@functools.lru_cache(maxsize=None)
def _supports_buffered_specs():
    """One-time capability probe for pl.Buffered(1) single-buffered specs."""
    if not hasattr(pl, "Buffered"):
        return False

    def _probe_kernel(a_ref, b_ref, o_ref):
        o_ref[...] = a_ref[...] + b_ref[...]

    try:
        fn = pl.pallas_call(
            _probe_kernel,
            out_shape=jax.ShapeDtypeStruct((8, 128), jnp.float32),
            grid_spec=pltpu.PrefetchScalarGridSpec(
                num_scalar_prefetch=0,
                grid=(1,),
                in_specs=[
                    pl.BlockSpec((8, 128), lambda i: (0, 0)),
                    pl.BlockSpec((8, 128), lambda i: (0, 0),
                                 pipeline_mode=pl.Buffered(1)),
                ],
                out_specs=pl.BlockSpec((8, 128), lambda i: (0, 0)),
            ),
        )
        z = jnp.zeros((8, 128), jnp.float32)
        jax.jit(fn).lower(z, z).compile()
        return True
    except Exception:
        return False


# ---------------------------------------------------------------------------
# Kernels
# ---------------------------------------------------------------------------
def _mlp_fused_kernel(num_layers, x_ref, *refs):
    """Fused MLP: num_layers linears, ReLU between all but the last.

    refs = (w0, b0, w1, b1, ..., w{L-1}, b{L-1}, out_ref).
    Dots accumulate in f32 (preferred_element_type); biases are f32;
    inter-layer activations go back to the compute dtype.
    """
    out_ref = refs[-1]
    param_refs = refs[:-1]
    act_dtype = x_ref.dtype

    h = x_ref[...]
    for l in range(num_layers):
        w_ref = param_refs[2 * l]
        b_ref = param_refs[2 * l + 1]
        acc = jnp.dot(h, w_ref[...], preferred_element_type=jnp.float32)
        acc = acc + b_ref[...]                              # f32 bias add
        if l < num_layers - 1:
            h = jnp.maximum(acc, 0.0).astype(act_dtype)     # nn.ReLU()
        else:
            out_ref[...] = acc.astype(out_ref.dtype)


def _linear_kernel(relu, x_ref, w_ref, b_ref, o_ref, acc_ref):
    """Per-layer (M, N, K)-tiled linear (+ optional ReLU) for the fallback."""
    @pl.when(pl.program_id(2) == 0)
    def _():
        acc_ref[...] = jnp.zeros_like(acc_ref)

    acc_ref[...] += jnp.dot(x_ref[...], w_ref[...],
                            preferred_element_type=jnp.float32)

    @pl.when(pl.program_id(2) == pl.num_programs(2) - 1)
    def _():
        acc = acc_ref[...] + b_ref[...]
        if relu:
            acc = jnp.maximum(acc, 0.0)
        o_ref[...] = acc.astype(o_ref.dtype)


# ---------------------------------------------------------------------------
# Parameter preparation (one-time; cache the result across forward calls)
# ---------------------------------------------------------------------------
def prepare_params(params, *, compute_dtype=jnp.bfloat16):
    """Pad every feature dim to a multiple of 128 and cast weights once.

    params: list of (W [d_in, d_out], b [d_out]).
    Returns (packed_params, meta) to pass to mlp_forward; doing this once
    avoids re-reading/re-writing every weight in HBM on each forward.
    """
    compute_dtype = jnp.dtype(compute_dtype)
    dims = [params[0][0].shape[0]] + [w.shape[1] for (w, _) in params]
    dims_p = [_round_up(d, _LANE) for d in dims]

    packed = []
    for l, (w, b) in enumerate(params):
        di, do = w.shape
        dip, dop = dims_p[l], dims_p[l + 1]
        w_p = jnp.zeros((dip, dop), compute_dtype).at[:di, :do].set(
            w.astype(compute_dtype))
        b_p = jnp.zeros((1, dop), jnp.float32).at[0, :do].set(
            b.astype(jnp.float32))
        packed.append((w_p, b_p))

    meta = {"dims": tuple(dims), "dims_p": tuple(dims_p)}
    return tuple(packed), meta


# ---------------------------------------------------------------------------
# Forward
# ---------------------------------------------------------------------------
def _pick_feature_tile(d, cap=512):
    for t in (cap, 256, 128):
        if t <= d and d % t == 0:
            return t
    return d


def _linear_pallas(h, w, b, *, relu, out_dtype, tm, budget):
    """One tiled linear layer; used when weights don't all fit in VMEM."""
    mp, dip = h.shape
    dop = w.shape[1]
    tn = _pick_feature_tile(dop)
    tk = _pick_feature_tile(dip)
    itemsize = jnp.dtype(h.dtype).itemsize
    o_itemsize = jnp.dtype(out_dtype).itemsize

    needed = (2 * (tm * tk * itemsize + tk * tn * w.dtype.itemsize
                   + 8 * tn * b.dtype.itemsize + tm * tn * o_itemsize)
              + tm * tn * 4 + (2 << 20))
    vmem_limit = int(min(max(needed, 32 << 20), budget))

    return pl.pallas_call(
        functools.partial(_linear_kernel, relu),
        out_shape=jax.ShapeDtypeStruct((mp, dop), out_dtype),
        grid_spec=pltpu.PrefetchScalarGridSpec(
            num_scalar_prefetch=0,
            grid=(mp // tm, dop // tn, dip // tk),
            in_specs=[pl.BlockSpec((tm, tk), lambda i, j, k: (i, k)),
                      pl.BlockSpec((tk, tn), lambda i, j, k: (k, j)),
                      pl.BlockSpec((1, tn), lambda i, j, k: (0, j))],
            out_specs=pl.BlockSpec((tm, tn), lambda i, j, k: (i, j)),
            scratch_shapes=[pltpu.VMEM((tm, tn), jnp.float32)]),
        compiler_params=pltpu.CompilerParams(
            dimension_semantics=("parallel", "parallel", "arbitrary"),
            vmem_limit_bytes=vmem_limit),
    )(h, w, b)


@functools.partial(jax.jit, static_argnums=(2, 3, 4, 5))
def _mlp_forward_jit(x, packed_params, out_dim, tile_m, out_dtype,
                     force_layerwise):
    batch, d_in = x.shape
    num_layers = len(packed_params)
    compute_dtype = jnp.dtype(packed_params[0][0].dtype)
    itemsize = compute_dtype.itemsize
    out_itemsize = jnp.dtype(out_dtype).itemsize
    dims_p = [packed_params[0][0].shape[0]] + [w.shape[1]
                                               for (w, _) in packed_params]

    # ---- VMEM budget from the real chip capacity (v7x: 64 MiB/TC) ---------
    cap = _vmem_capacity_bytes()
    budget = max(cap - (8 << 20), 16 << 20)

    use_buffered = _supports_buffered_specs()
    buf_factor = 1 if use_buffered else 2          # 1x when single-buffered
    weight_bytes = sum(w.size * w.dtype.itemsize + 8 * b.shape[1] * 4
                       for (w, b) in packed_params)
    weight_vmem = buf_factor * weight_bytes

    m_align = 16 if itemsize == 2 else 8           # bf16 sublane packing
    batch_a = _round_up(batch, m_align)

    def fused_vmem(tm):
        io = 2 * tm * dims_p[0] * itemsize + 2 * tm * dims_p[-1] * out_itemsize
        act = tm * max(dims_p) * (4 + itemsize)    # f32 acc + compute-dtype h
        return weight_vmem + io + act + (2 << 20)

    def pick_tm(tm_req, fits):
        tm = max(m_align, _round_up(min(tm_req, batch_a), m_align))
        while tm > m_align and not fits(tm):
            tm = max(m_align, _round_up(tm // 2, m_align))
        # >=2 grid steps when batch allows, so both v7x TCs get work.
        if batch_a // tm < 2 and batch_a >= 2 * m_align:
            tm = max(m_align, (batch_a // 2) // m_align * m_align)
        return tm

    use_fused = (not force_layerwise
                 and weight_vmem <= int(0.7 * budget)
                 and fused_vmem(m_align) <= budget)

    if use_fused:
        tm = pick_tm(tile_m, lambda t: fused_vmem(t) <= budget)
        batch_p = _round_up(batch, tm)
        grid_m = batch_p // tm

        x_p = jnp.zeros((batch_p, dims_p[0]), compute_dtype)
        x_p = x_p.at[:batch, :d_in].set(x.astype(compute_dtype))

        flat = [x_p]
        in_specs = [pl.BlockSpec((tm, dims_p[0]), lambda i: (i, 0))]
        for (w, b) in packed_params:
            flat += [w, b]
            for arr in (w, b):
                if use_buffered:
                    # Constant index_map: resident once, one buffer, one DMA.
                    spec = pl.BlockSpec(arr.shape, lambda i: (0, 0),
                                        pipeline_mode=pl.Buffered(1))
                else:
                    spec = pl.BlockSpec(arr.shape, lambda i: (0, 0))
                in_specs.append(spec)

        flops = 2 * batch_p * sum(dims_p[l] * dims_p[l + 1]
                                  for l in range(num_layers))
        bytes_accessed = (batch_p * dims_p[0] * itemsize + weight_bytes
                          + batch_p * dims_p[-1] * out_itemsize)
        cost = pl.CostEstimate(flops=int(flops), transcendentals=0,
                               bytes_accessed=int(bytes_accessed))
        vmem_limit = int(min(max(fused_vmem(tm) + (4 << 20), 32 << 20),
                             budget))

        out_p = pl.pallas_call(
            functools.partial(_mlp_fused_kernel, num_layers),
            out_shape=jax.ShapeDtypeStruct((batch_p, dims_p[-1]), out_dtype),
            grid_spec=pltpu.PrefetchScalarGridSpec(
                num_scalar_prefetch=0,
                grid=(grid_m,),
                in_specs=in_specs,
                out_specs=pl.BlockSpec((tm, dims_p[-1]), lambda i: (i, 0)),
            ),
            compiler_params=pltpu.CompilerParams(
                dimension_semantics=("parallel",),
                vmem_limit_bytes=vmem_limit),
            cost_estimate=cost,
        )(*flat)
        return out_p[:batch, :out_dim]

    # ---- layer-wise fallback: weights too large to keep resident ----------
    tm = pick_tm(min(tile_m, 256), lambda t: True)
    batch_p = _round_up(batch, tm)
    h = jnp.zeros((batch_p, dims_p[0]), compute_dtype)
    h = h.at[:batch, :d_in].set(x.astype(compute_dtype))
    for l, (w, b) in enumerate(packed_params):
        relu = l < num_layers - 1
        layer_dtype = compute_dtype if relu else out_dtype
        h = _linear_pallas(h, w, b, relu=relu, out_dtype=layer_dtype,
                           tm=tm, budget=budget)
    return h[:batch, :out_dim]


def mlp_forward(x, prepared, *, tile_m=512, out_dtype=None,
                force_layerwise=False):
    """x: [batch, input_size]; prepared: output of prepare_params()."""
    packed, meta = prepared
    out_dim = int(meta["dims"][-1])
    out_dtype = jnp.dtype(out_dtype if out_dtype is not None else x.dtype)
    return _mlp_forward_jit(x, tuple(packed), out_dim, int(tile_m),
                            out_dtype, bool(force_layerwise))


# ---------------------------------------------------------------------------
# Reference & init
# ---------------------------------------------------------------------------
def mlp_reference(x, params, compute_dtype=jnp.float32):
    """Pure-JAX reference mirroring the kernel's dtype policy."""
    h = x.astype(compute_dtype)
    acc = None
    for l, (w, b) in enumerate(params):
        acc = jnp.dot(h, w.astype(compute_dtype),
                      preferred_element_type=jnp.float32)
        acc = acc + b.astype(jnp.float32)
        if l < len(params) - 1:
            h = jnp.maximum(acc, 0.0).astype(compute_dtype)
    return acc.astype(x.dtype)


def init_mlp_params(key, input_size, output_size, hidden):
    dims_in = [input_size] + hidden
    dims_out = hidden + [output_size]
    params = []
    for d_in, d_out in zip(dims_in, dims_out):
        key, kw, kb = jax.random.split(key, 3)
        bound = 1.0 / jnp.sqrt(d_in)        # mimics nn.Linear fan-in init
        w = jax.random.uniform(kw, (d_in, d_out), jnp.float32, -bound, bound)
        b = jax.random.uniform(kb, (d_out,), jnp.float32, -bound, bound)
        params.append((w, b))
    return params


if __name__ == "__main__":
    key = jax.random.PRNGKey(0)
    batch, input_size, output_size = 16, 32, 16
    hidden = [64, 48]

    kx, kp = jax.random.split(key)
    x = jax.random.normal(kx, (batch, input_size), jnp.float32)
    params = init_mlp_params(kp, input_size, output_size, hidden)

    # One-time parameter prep (cache these across forwards).
    prep_bf16 = prepare_params(params, compute_dtype=jnp.bfloat16)
    prep_f32 = prepare_params(params, compute_dtype=jnp.float32)

    # bf16 compute path (default, MXU-native), f32 path (tight check),
    # and the layer-wise fallback path (exercised explicitly here).
    out_bf16 = jax.block_until_ready(mlp_forward(x, prep_bf16))
    out_f32 = jax.block_until_ready(mlp_forward(x, prep_f32))
    out_lw = jax.block_until_ready(
        mlp_forward(x, prep_f32, force_layerwise=True))

    ref_f32 = mlp_reference(x, params, compute_dtype=jnp.float32)
    ref_bf16 = mlp_reference(x, params, compute_dtype=jnp.bfloat16)

    assert out_bf16.shape == (batch, output_size)
    assert out_f32.shape == (batch, output_size)
    assert out_lw.shape == (batch, output_size)
    assert jnp.allclose(out_f32, ref_f32, atol=1e-4, rtol=1e-4), \
        "f32 fused kernel mismatch vs f32 reference"
    assert jnp.allclose(out_lw, ref_f32, atol=1e-4, rtol=1e-4), \
        "layer-wise fallback mismatch vs f32 reference"
    assert jnp.allclose(out_bf16, ref_bf16, atol=2e-3, rtol=2e-3), \
        "bf16 kernel mismatch vs bf16 reference"
    assert jnp.allclose(out_bf16, ref_f32, atol=1e-1, rtol=1e-1), \
        "bf16 kernel drifted too far from f32 reference"

    print("KERNEL_OK")
</pallas_src>

<mosaic_0001>
module attributes {stable_mosaic.version = 11 : i64} {
  func.func @_mlp_fused_kernel(%arg0: i32, %arg1: memref<16x128xbf16, #tpu.memory_space<vmem>>, %arg2: memref<128x128xbf16, #tpu.memory_space<vmem>>, %arg3: memref<1x128xf32, #tpu.memory_space<vmem>>, %arg4: memref<128x128xbf16, #tpu.memory_space<vmem>>, %arg5: memref<1x128xf32, #tpu.memory_space<vmem>>, %arg6: memref<128x128xbf16, #tpu.memory_space<vmem>>, %arg7: memref<1x128xf32, #tpu.memory_space<vmem>>, %arg8: memref<16x128xf32, #tpu.memory_space<vmem>>) attributes {dimension_semantics = [#tpu.dimension_semantics<parallel>], iteration_bounds = array<i64: 1>, scalar_prefetch = 0 : i64, scratch_operands = 0 : i64, tpu.core_type = #tpu.core_type<tc>, window_params = [{transform_indices = @transform_0, window_bounds = array<i64: 16, 128>}, {pipeline_mode = #tpu.pipeline_mode<synchronous>, transform_indices = @transform_1, window_bounds = array<i64: 128, 128>}, {pipeline_mode = #tpu.pipeline_mode<synchronous>, transform_indices = @transform_2, window_bounds = array<i64: 1, 128>}, {pipeline_mode = #tpu.pipeline_mode<synchronous>, transform_indices = @transform_3, window_bounds = array<i64: 128, 128>}, {pipeline_mode = #tpu.pipeline_mode<synchronous>, transform_indices = @transform_4, window_bounds = array<i64: 1, 128>}, {pipeline_mode = #tpu.pipeline_mode<synchronous>, transform_indices = @transform_5, window_bounds = array<i64: 128, 128>}, {pipeline_mode = #tpu.pipeline_mode<synchronous>, transform_indices = @transform_6, window_bounds = array<i64: 1, 128>}, {transform_indices = @transform_7, window_bounds = array<i64: 16, 128>}]} {
    %c0 = arith.constant 0 : index
    %c0_0 = arith.constant 0 : index
    %0 = vector.load %arg1[%c0, %c0_0] : memref<16x128xbf16, #tpu.memory_space<vmem>>, vector<16x128xbf16>
    %c0_1 = arith.constant 0 : index
    %c0_2 = arith.constant 0 : index
    %1 = vector.load %arg2[%c0_1, %c0_2] : memref<128x128xbf16, #tpu.memory_space<vmem>>, vector<128x128xbf16>
    %cst = arith.constant dense<0.000000e+00> : vector<16x128xf32>
    %2 = tpu.matmul %0, %1, %cst {dimension_numbers = #tpu.dot_dimension_numbers<[1], [0], [0], [1], [0, 0, 1, 1], [], []>} : vector<16x128xbf16>, vector<128x128xbf16>, vector<16x128xf32> -> vector<16x128xf32>
    %c0_3 = arith.constant 0 : index
    %c0_4 = arith.constant 0 : index
    %3 = vector.load %arg3[%c0_3, %c0_4] : memref<1x128xf32, #tpu.memory_space<vmem>>, vector<1x128xf32>
    %4 = vector.broadcast %3 : vector<1x128xf32> to vector<16x128xf32>
    %5 = arith.addf %2, %4 : vector<16x128xf32>
    %cst_5 = arith.constant 0.000000e+00 : f32
    %6 = vector.broadcast %cst_5 : f32 to vector<16x128xf32>
    %7 = arith.maximumf %5, %6 : vector<16x128xf32>
    %8 = arith.truncf %7 : vector<16x128xf32> to vector<16x128xbf16>
    %c0_6 = arith.constant 0 : index
    %c0_7 = arith.constant 0 : index
    %9 = vector.load %arg4[%c0_6, %c0_7] : memref<128x128xbf16, #tpu.memory_space<vmem>>, vector<128x128xbf16>
    %cst_8 = arith.constant dense<0.000000e+00> : vector<16x128xf32>
    %10 = tpu.matmul %8, %9, %cst_8 {dimension_numbers = #tpu.dot_dimension_numbers<[1], [0], [0], [1], [0, 0, 1, 1], [], []>} : vector<16x128xbf16>, vector<128x128xbf16>, vector<16x128xf32> -> vector<16x128xf32>
    %c0_9 = arith.constant 0 : index
    %c0_10 = arith.constant 0 : index
    %11 = vector.load %arg5[%c0_9, %c0_10] : memref<1x128xf32, #tpu.memory_space<vmem>>, vector<1x128xf32>
    %12 = vector.broadcast %11 : vector<1x128xf32> to vector<16x128xf32>
    %13 = arith.addf %10, %12 : vector<16x128xf32>
    %cst_11 = arith.constant 0.000000e+00 : f32
    %14 = vector.broadcast %cst_11 : f32 to vector<16x128xf32>
    %15 = arith.maximumf %13, %14 : vector<16x128xf32>
    %16 = arith.truncf %15 : vector<16x128xf32> to vector<16x128xbf16>
    %c0_12 = arith.constant 0 : index
    %c0_13 = arith.constant 0 : index
    %17 = vector.load %arg6[%c0_12, %c0_13] : memref<128x128xbf16, #tpu.memory_space<vmem>>, vector<128x128xbf16>
    %cst_14 = arith.constant dense<0.000000e+00> : vector<16x128xf32>
    %18 = tpu.matmul %16, %17, %cst_14 {dimension_numbers = #tpu.dot_dimension_numbers<[1], [0], [0], [1], [0, 0, 1, 1], [], []>} : vector<16x128xbf16>, vector<128x128xbf16>, vector<16x128xf32> -> vector<16x128xf32>
    %c0_15 = arith.constant 0 : index
    %c0_16 = arith.constant 0 : index
    %19 = vector.load %arg7[%c0_15, %c0_16] : memref<1x128xf32, #tpu.memory_space<vmem>>, vector<1x128xf32>
    %20 = vector.broadcast %19 : vector<1x128xf32> to vector<16x128xf32>
    %21 = arith.addf %18, %20 : vector<16x128xf32>
    %c0_17 = arith.constant 0 : index
    %c0_18 = arith.constant 0 : index
    %22 = vector.load %arg8[%c0_17, %c0_18] : memref<16x128xf32, #tpu.memory_space<vmem>>, vector<16x128xf32>
    tpu.vector_store %arg8[%c0_17, %c0_18], %21 {strides = array<i32>} : memref<16x128xf32, #tpu.memory_space<vmem>>, vector<16x128xf32>,
    return
  }
  func.func @transform_0(%arg0: i32) -> (i32, i32) {
    %c0_i32 = arith.constant 0 : i32
    %c0_i32_0 = arith.constant 0 : i32
    return %arg0, %c0_i32 : i32, i32
  }
  func.func @transform_1(%arg0: i32) -> (i32, i32) {
    %c0_i32 = arith.constant 0 : i32
    %c0_i32_0 = arith.constant 0 : i32
    %c0_i32_1 = arith.constant 0 : i32
    return %c0_i32, %c0_i32_0 : i32, i32
  }
  func.func @transform_2(%arg0: i32) -> (i32, i32) {
    %c0_i32 = arith.constant 0 : i32
    %c0_i32_0 = arith.constant 0 : i32
    %c0_i32_1 = arith.constant 0 : i32
    return %c0_i32, %c0_i32_0 : i32, i32
  }
  func.func @transform_3(%arg0: i32) -> (i32, i32) {
    %c0_i32 = arith.constant 0 : i32
    %c0_i32_0 = arith.constant 0 : i32
    %c0_i32_1 = arith.constant 0 : i32
    return %c0_i32, %c0_i32_0 : i32, i32
  }
  func.func @transform_4(%arg0: i32) -> (i32, i32) {
    %c0_i32 = arith.constant 0 : i32
    %c0_i32_0 = arith.constant 0 : i32
    %c0_i32_1 = arith.constant 0 : i32
    return %c0_i32, %c0_i32_0 : i32, i32
  }
  func.func @transform_5(%arg0: i32) -> (i32, i32) {
    %c0_i32 = arith.constant 0 : i32
    %c0_i32_0 = arith.constant 0 : i32
    %c0_i32_1 = arith.constant 0 : i32
    return %c0_i32, %c0_i32_0 : i32, i32
  }
  func.func @transform_6(%arg0: i32) -> (i32, i32) {
    %c0_i32 = arith.constant 0 : i32
    %c0_i32_0 = arith.constant 0 : i32
    %c0_i32_1 = arith.constant 0 : i32
    return %c0_i32, %c0_i32_0 : i32, i32
  }
  func.func @transform_7(%arg0: i32) -> (i32, i32) {
    %c0_i32 = arith.constant 0 : i32
    %c0_i32_0 = arith.constant 0 : i32
    return %arg0, %c0_i32 : i32, i32
  }
}

</mosaic_0001>

<bundles_post_ra>
// kernel: _mlp_forward_jit.1
= control target key start
LH: loop header
LB: loop body
LE: loop exit
PB: predicated region body
PF: predicated region fallthrough
CT: control target
= control target key end

     0   :  { %12 = vsyncpa [#allocation3], 0  ;;  %s779_s0 = inlined_call_operand.vmem [shape: bf16[16,128], index: 0, kind: input, shape index: {}]   ;;  %s780_s1 = inlined_call_operand.hbm [shape: bf16[128,128], index: 1, kind: input, shape index: {}]   ;;  %s781_s2 = inlined_call_operand.vmem [shape: f32[1,128], index: 2, kind: input, shape index: {}]   ;;  %s782_s3 = inlined_call_operand.hbm [shape: bf16[128,128], index: 3, kind: input, shape index: {}]   ;;  %s783_s4 = inlined_call_operand.vmem [shape: f32[1,128], index: 4, kind: input, shape index: {}]   ;;  %s784_s5 = inlined_call_operand.hbm [shape: bf16[128,128], index: 5, kind: input, shape index: {}]   ;;  %s785_s6 = inlined_call_operand.vmem [shape: f32[1,128], index: 6, kind: input, shape index: {}]   ;;  %s786_s7 = inlined_call_operand.hbm [shape: f32[16,128], index: 7, kind: output, shape index: {}]  }
   0x1   :  { %13 = vsyncpa [#allocation6], 0 }
   0x2   :  { %14 = vsyncpa [#allocation4], 0  ;;  %s675_s24 = smov [#allocation5]   ;;  %s676_s26 = smov [#allocation2]  }
   0x3   :  { %s36_s25 = sshll.u32 %s675_s24, 4  ;;  %s22_s27 = sshll.u32 %s676_s26, 4  ;;  %s37_s25 = int_to_ptr.vmem [resolvable:$true] %s36_s25  ;;  %s23_s27 = int_to_ptr.vmem [resolvable:$true] %s22_s27 }
   0x4   :  { %s597_s28 = scalar_lea.vmem %s37_s25, 1024  ;;  %p602_p1 = scmp.lt.s32.totalorder %s37_s25, %s37_s25 }
   0x5   :  { %p598_p0 = scmp.ne.s32.totalorder %s37_s25, %s597_s28  ;;  %p603_p2 = scmp.lt.s32.totalorder %s597_s28, %s597_s28 }
   0x7   :  { %p604_p3 = por %p603_p2, %p602_p1 }
   0x9   :  { %p605_p4 = pnand %p604_p3, %p598_p0 }
   0xb   :  { %608 = shalt.err (!%p605_p4)
}
   0xc   :  { %s677_s29 = smov 64   ;;  %s678_s30 = smov 4  }
   0xd   :  { %42 = dma.hbm_to_vmem [thread:$0]  %s782_s3, 1024, %s37_s25, [#allocation6], %s677_s29, %s677_s29, %s678_s30  }
   0xe   :  { %s617_s10 = scalar_lea.vmem %s23_s27, 1024  ;;  %p622_p6 = scmp.lt.s32.totalorder %s23_s27, %s23_s27 }
   0xf   :  { %p618_p5 = scmp.ne.s32.totalorder %s23_s27, %s617_s10  ;;  %p623_p7 = scmp.lt.s32.totalorder %s617_s10, %s617_s10 }
  0x11   :  { %p624_p8 = por %p623_p7, %p622_p6 }
  0x13   :  { %p625_p9 = pnand %p624_p8, %p618_p5 }
  0x15   :  { %628 = shalt.err (!%p625_p9)
}
  0x16   :  { %28 = dma.hbm_to_vmem [thread:$0]  %s780_s1, 1024, %s23_s27, [#allocation3], %s677_s29, %s677_s29, %s678_s30  }
  0x17   :  { %s679_s13 = smov [#allocation7]  }
  0x18   :  { %s50_s14 = sshll.u32 %s679_s13, 4  ;;  %s51_s14 = int_to_ptr.vmem [resolvable:$true] %s50_s14 }
  0x19   :  { %s637_s15 = scalar_lea.vmem %s51_s14, 1024  ;;  %p642_p11 = scmp.lt.s32.totalorder %s51_s14, %s51_s14 }
  0x1a   :  { %p638_p10 = scmp.ne.s32.totalorder %s51_s14, %s637_s15  ;;  %p643_p12 = scmp.lt.s32.totalorder %s637_s15, %s637_s15 }
  0x1c   :  { %p644_p13 = por %p643_p12, %p642_p11 }
  0x1e   :  { %p645_p0 = pnand %p644_p13, %p638_p10 }
  0x20   :  { %648 = shalt.err (!%p645_p0)
}
  0x21   :  { %56 = dma.hbm_to_vmem [thread:$0]  %s784_s5, 1024, %s51_s14, [#allocation6], %s677_s29, %s677_s29, %s678_s30  }
  0x22   :  { %669 = dma.done.wait [#allocation3], 1024  }
  0x23   :  { %670 = vsyncadd [#allocation3], 4294966272 }
  0x24   :  { %671 = dma.done.wait [#allocation6], 2048  }
  0x25   :  { %672 = vsyncadd [#allocation6], 4294965248  ;;  %v680_v0 = vmov 0.0   ;;  %vm681_vm0 = vmmov 0   ;;  %v564_v1 = vld [vmem:[#allocation2 + $0x38] sm:$0xff]   ;;  %v565_v2 = vld [vmem:[#allocation2 + $0x30] sm:$0xff]  }
  0x26   :  { %494 = vmatprep.subr.bf16.mxu0 %v680_v0  ;;  %510 = vmatprep.mubr.msk.bf16.mxu0 %vm681_vm0, %v680_v0  ;;  %v566_v3 = vld [vmem:[#allocation2 + $0x28] sm:$0xff]   ;;  %v573_v4 = vld [vmem:[#allocation5 + $0x38] sm:$0xff]   ;;  %v567_v5 = vld [vmem:[#allocation2 + $0x20] sm:$0xff]   ;;  %s682_s21 = smov [#allocation8]  }
  0x27   :  { %514 = vmatprep.subr.bf16.mxu1 %v680_v0  ;;  %530 = vmatprep.mubr.msk.bf16.mxu1 %vm681_vm0, %v680_v0  ;;  %v574_v6 = vld [vmem:[#allocation5 + $0x30] sm:$0xff]   ;;  %v568_v7 = vld [vmem:[#allocation2 + $0x18] sm:$0xff]   ;;  %v575_v8 = vld [vmem:[#allocation5 + $0x28] sm:$0xff]   ;;  %s426_s22 = sshll.u32 %s682_s21, 4  ;;  %s427_s22 = int_to_ptr.vmem [resolvable:$true] %s426_s22 }
  0x28   :  { %495 = vmatpush3.bf16.msra.mxu0 %v564_v1  ;;  %515 = vmatpush3.bf16.msra.mxu1 %v573_v4  ;;  %v569_v9 = vld [vmem:[#allocation2 + $0x10] sm:$0xff]   ;;  %v576_v10 = vld [vmem:[#allocation5 + $0x20] sm:$0xff]   ;;  %v570_v11 = vld [vmem:[#allocation2 + $0x8] sm:$0xff]   ;;  %p654_p2 = scmp.lt.s32.totalorder %s427_s22, %s427_s22 }
  0x29   :  { %496 = vmatprep.subr.bf16.mxu0 %v680_v0  ;;  %516 = vmatprep.subr.bf16.mxu1 %v680_v0  ;;  %v577_v12 = vld [vmem:[#allocation5 + $0x18] sm:$0xff]   ;;  %v571_v13 = vld [vmem:[#allocation2] sm:$0xff]   ;;  %v578_v15 = vld [vmem:[#allocation5 + $0x10] sm:$0xff]  }
  0x2a   :  { %v572_v14 = vld [vmem:[%s779_s0] sm:$0xff]   ;;  %v579_v16 = vld [vmem:[#allocation5 + $0x8] sm:$0xff]   ;;  %v581_v18 = vld [vmem:[#allocation7 + $0x38] sm:$0xff]  }
  0x2b   :  { %v580_v17 = vld [vmem:[#allocation5] sm:$0xff]   ;;  %v582_v19 = vld [vmem:[#allocation7 + $0x30] sm:$0xff]   ;;  %v583_v20 = vld [vmem:[#allocation7 + $0x28] sm:$0xff]  }
  0x2c   :  { %497 = vmatpush3.bf16.msra.mxu0 %v565_v2  ;;  %517 = vmatpush3.bf16.msra.mxu1 %v574_v6  ;;  %v584_v21 = vld [vmem:[#allocation7 + $0x20] sm:$0xff]   ;;  %v585_v22 = vld [vmem:[#allocation7 + $0x18] sm:$0xff]   ;;  %v586_v33 = vld [vmem:[#allocation7 + $0x10] sm:$0xff]  }
  0x2d   :  { %498 = vmatprep.subr.bf16.mxu0 %v680_v0  ;;  %518 = vmatprep.subr.bf16.mxu1 %v680_v0  ;;  %v439_v23 = vld [vmem:[%s781_s2] ss:$0 sm:$0xff]  ;;  %v587_v34 = vld [vmem:[#allocation7 + $0x8] sm:$0xff]  }
  0x2e   :  { %v588_v35 = vld [vmem:[#allocation7] sm:$0xff]  }
  0x2f   :  { %v449_v36 = vld [vmem:[%s783_s4] ss:$0 sm:$0xff]  ;;  %s649_s4 = scalar_lea.vmem %s427_s22, 256 }
  0x30   :  { %499 = vmatpush3.bf16.msra.mxu0 %v566_v3  ;;  %519 = vmatpush3.bf16.msra.mxu1 %v575_v8  ;;  %v458_v46 = vld [vmem:[%s785_s6] ss:$0 sm:$0xff]  ;;  %p650_p1 = scmp.ne.s32.totalorder %s427_s22, %s649_s4  ;;  %p655_p3 = scmp.lt.s32.totalorder %s649_s4, %s649_s4 }
  0x31   :  { %500 = vmatprep.subr.bf16.mxu0 %v680_v0  ;;  %520 = vmatprep.subr.bf16.mxu1 %v680_v0 }
  0x32   :  { %p656_p4 = por %p655_p3, %p654_p2 }
  0x34   :  { %501 = vmatpush3.bf16.msra.mxu0 %v567_v5  ;;  %521 = vmatpush3.bf16.msra.mxu1 %v576_v10  ;;  %p657_p5 = pnand %p656_p4, %p650_p1 }
  0x35   :  { %502 = vmatprep.subr.bf16.mxu0 %v680_v0  ;;  %522 = vmatprep.subr.bf16.mxu1 %v680_v0 }
  0x38   :  { %503 = vmatpush3.bf16.msra.mxu0 %v568_v7  ;;  %523 = vmatpush3.bf16.msra.mxu1 %v577_v12 }
  0x39   :  { %504 = vmatprep.subr.bf16.mxu0 %v680_v0  ;;  %524 = vmatprep.subr.bf16.mxu1 %v680_v0 }
  0x3c   :  { %505 = vmatpush3.bf16.msra.mxu0 %v569_v9  ;;  %525 = vmatpush3.bf16.msra.mxu1 %v578_v15 }
  0x3d   :  { %506 = vmatprep.subr.bf16.mxu0 %v680_v0  ;;  %526 = vmatprep.subr.bf16.mxu1 %v680_v0 }
  0x40   :  { %507 = vmatpush3.bf16.msra.mxu0 %v570_v11  ;;  %527 = vmatpush3.bf16.msra.mxu1 %v579_v16 }
  0x41   :  { %508 = vmatprep.subr.bf16.mxu0 %v680_v0  ;;  %528 = vmatprep.subr.bf16.mxu1 %v680_v0 }
  0x44   :  { %509 = vmatpush3.bf16.msra.mxu0 %v571_v13  ;;  %529 = vmatpush3.bf16.msra.mxu1 %v580_v17 }
  0x45   :  { %534 = vmatprep.subr.bf16.mxu0 %v680_v0 }
  0x47   :  { %511 = vmatmul.mubr.bf16.vlgmr.msra.gmra.mxu0 %v572_v14 }
  0x48   :  { %550 = vmatprep.mubr.msk.bf16.mxu0 %vm681_vm0, %v680_v0  ;;  %535 = vmatpush3.bf16.msra.mxu0 %v581_v18 }
  0x49   :  { %536 = vmatprep.subr.bf16.mxu0 %v680_v0 }
  0x4c   :  { %537 = vmatpush3.bf16.msra.mxu0 %v582_v19 }
  0x4d   :  { %538 = vmatprep.subr.bf16.mxu0 %v680_v0 }
  0x50   :  { %539 = vmatpush3.bf16.msra.mxu0 %v583_v20 }
  0x51   :  { %540 = vmatprep.subr.bf16.mxu0 %v680_v0 }
  0x54   :  { %541 = vmatpush3.bf16.msra.mxu0 %v584_v21 }
  0x55   :  { %542 = vmatprep.subr.bf16.mxu0 %v680_v0 }
  0x58   :  { %543 = vmatpush3.bf16.msra.mxu0 %v585_v22 }
  0x59   :  { %544 = vmatprep.subr.bf16.mxu0 %v680_v0 }
  0x5c   :  { %545 = vmatpush3.bf16.msra.mxu0 %v586_v33 }
  0x5d   :  { %546 = vmatprep.subr.bf16.mxu0 %v680_v0 }
  0x60   :  { %547 = vmatpush3.bf16.msra.mxu0 %v587_v34 }
  0x61   :  { %548 = vmatprep.subr.bf16.mxu0 %v680_v0 }
  0x64   :  { %549 = vmatpush3.bf16.msra.mxu0 %v588_v35 }
 0x107   :  { %v182_v24 = vpop.f32.mrf.mxu0 }
 0x108   :  { %v183_v26 = vadd.f32 %v439_v23, %v182_v24 }
 0x109   :  { %v512_v25 = vpop.f32.mrf.mxu0 }
 0x10a   :  { %v189_v30 = vmax.f32 %v183_v26, 0.0 }
 0x10b   :  { %v185_v27 = vpop.f32.mrf.mxu0 }
 0x10c   :  { %v186_v28 = vadd.f32 %v439_v23, %v185_v27 }
 0x10d   :  { %v513_v29 = vpop.f32.mrf.mxu0 }
 0x10e   :  { %v190_v31 = vmax.f32 %v186_v28, 0.0 }
 0x110   :  { %v191_v32 = vpack.c.bf16 %v190_v31, %v189_v30 }
 0x112   :  { %531 = vmatmul.mubr.bf16.vlgmr.msra.gmra.mxu1 %v191_v32 }
 0x1d2   :  { %v297_v37 = vpop.f32.mrf.mxu1 }
 0x1d3   :  { %v298_v39 = vadd.f32 %v449_v36, %v297_v37 }
 0x1d4   :  { %v532_v38 = vpop.f32.mrf.mxu1 }
 0x1d5   :  { %v304_v43 = vmax.f32 %v298_v39, 0.0 }
 0x1d6   :  { %v300_v40 = vpop.f32.mrf.mxu1 }
 0x1d7   :  { %v301_v41 = vadd.f32 %v449_v36, %v300_v40 }
 0x1d8   :  { %v533_v42 = vpop.f32.mrf.mxu1 }
 0x1d9   :  { %v305_v44 = vmax.f32 %v301_v41, 0.0 }
 0x1db   :  { %v306_v45 = vpack.c.bf16 %v305_v44, %v304_v43 }
 0x1dd   :  { %551 = vmatmul.mubr.bf16.vlgmr.msra.gmra.mxu0 %v306_v45 }
 0x29d   :  { %v412_v47 = vpop.f32.mrf.mxu0 }
 0x29e   :  { %v413_v48 = vadd.f32 %v458_v46, %v412_v47 }
 0x29f   :  { %v552_v49 = vpop.f32.mrf.mxu0 }
 0x2a0   :  { %419 = vst [vmem:[#allocation8] sm:$0xff] %v413_v48 }
 0x2a1   :  { %v415_v50 = vpop.f32.mrf.mxu0 }
 0x2a2   :  { %v416_v51 = vadd.f32 %v458_v46, %v415_v50 }
 0x2a3   :  { %v553_v52 = vpop.f32.mrf.mxu0 }
 0x2a4   :  { %420 = vst [vmem:[#allocation8 + $0x8] sm:$0xff] %v416_v51 }
 0x2a5   :  { %660 = shalt.err (!%p657_p5)
}
 0x2a6   :  { %s683_s23 = smov 128   ;;  %s684_s6 = smov 8  }
 0x2a7   :  { %432 = dma.vmem_to_hbm [thread:$0]  %s427_s22, 256, %s786_s7, [#allocation4], %s683_s23, %s683_s23, %s684_s6  }
 0x2a8   :  { %673 = dma.done.wait [#allocation4], 256  }
 0x2a9   :  { %674 = vsyncadd [#allocation4], 4294967040 }
 0x2aa   :  { %436 = vsyncpa [#allocation3], 1 }
 0x2ab   :  { %437 = vsyncpa [#allocation6], 1 }
 0x2ac   :  { %438 = vsyncpa [#allocation4], 1 }

</bundles_post_ra>
